<compile_context>
chip_gen: v7x
topology: tpu7x:2x2x1
jax: 0.10.0
libtpu: 0.0.40
codegen_flags: <defaults>
</compile_context>

<pallas_src>
import jax
import jax.numpy as jnp
from jax.experimental import pallas as pl
from jax.experimental.pallas import tpu as pltpu


def _attention_kernel(x_ref, bias_ref, w_ref, o_ref):
    # x_ref:    (TB, L, D)  block of input rows
    # bias_ref: (TB, L)     additive mask bias (0 = keep, -inf = masked)
    # w_ref:    (1, D)      nn.Linear(D, 1, bias=False).weight
    # o_ref:    (TB, L)     softmax output block (lane-dense last dim)
    x = x_ref[...].astype(jnp.float32)                    # (TB, L, D)
    w = w_ref[...].astype(jnp.float32)                    # (1, D)

    # Linear(D -> 1): broadcast multiply (VPU) + reduce over the lane axis
    # (XLU).  Both are well under the HBM load rate; kernel is mem-bound.
    scores = jnp.sum(x * w[None, :, :], axis=-1)          # (TB, L)

    # masked_fill(x_mask, -inf) as an additive bias.
    scores = scores + bias_ref[...]

    # Softmax along the sequence (lane) axis.
    mx = jnp.max(scores, axis=-1, keepdims=True)
    e = jnp.exp(scores - mx)
    denom = jnp.sum(e, axis=-1, keepdims=True)
    o_ref[...] = (e * pl.reciprocal(denom, approx=True)).astype(o_ref.dtype)


# Per-buffer x-block budget. With double buffering (2x) plus the tiny bias /
# weight / output blocks this stays well under the scoped VMEM limit on every
# TPU generation.
_X_BLOCK_BYTES = 6 * 1024 * 1024


def attention_forward(x, x_mask, weight, *, block_rows=None):
    """matchzoo Attention forward.

    x:      [B, L, D] float32 (or bfloat16 — upcast to f32 inside the kernel)
    x_mask: [B, L]    bool, True = masked position
    weight: [1, D]    nn.Linear(D, 1, bias=False).weight
    returns [B, L]    float32 attention weights (softmax over L)
    """
    B, L, D = x.shape
    assert x_mask.shape == (B, L)
    assert weight.shape == (1, D)

    # --- choose batch rows per grid step from the VMEM budget ----------------
    if block_rows is None:
        row_bytes = L * D * jnp.dtype(x.dtype).itemsize
        block_rows = max(1, _X_BLOCK_BYTES // max(1, row_bytes))
    if block_rows >= B:
        tb, b_pad = B, B                       # single full-extent block
    else:
        tb = max(8, (block_rows // 8) * 8)     # keep sublane (8) divisibility
        b_pad = pl.cdiv(B, tb) * tb

    # Mask -> additive bias. Padded rows are left "valid" (bias 0) so they do
    # not generate NaNs; they are sliced away below.
    bias = jnp.where(x_mask, -jnp.inf, 0.0).astype(jnp.float32)
    if b_pad != B:
        x = jnp.pad(x, ((0, b_pad - B), (0, 0), (0, 0)))
        bias = jnp.pad(bias, ((0, b_pad - B), (0, 0)))

    w = weight.astype(jnp.float32)              # (1, D)

    out = pl.pallas_call(
        _attention_kernel,
        out_shape=jax.ShapeDtypeStruct((b_pad, L), jnp.float32),
        grid=(b_pad // tb,),
        in_specs=[
            pl.BlockSpec((tb, L, D), lambda b: (b, 0, 0)),   # x block
            pl.BlockSpec((tb, L), lambda b: (b, 0)),         # mask bias block
            pl.BlockSpec((1, D), lambda b: (0, 0)),          # shared weight
        ],
        out_specs=pl.BlockSpec((tb, L), lambda b: (b, 0)),   # lane-dense out
        compiler_params=pltpu.CompilerParams(
            dimension_semantics=("parallel",),
            vmem_limit_bytes=32 * 1024 * 1024,
        ),
    )(x, bias, w)
    return out[:B]


def _reference(x, x_mask, weight):
    scores = jnp.einsum("bld,d->bl", x, weight[0])
    scores = jnp.where(x_mask, -jnp.inf, scores)
    return jax.nn.softmax(scores, axis=-1)


if __name__ == "__main__":
    key = jax.random.PRNGKey(0)
    kx, km, kw = jax.random.split(key, 3)

    B, L, D = 2, 8, 32  # batch, seq, hidden (input_size=D)

    x = jax.random.normal(kx, (B, L, D), dtype=jnp.float32)
    # Random boolean mask; guarantee at least one unmasked position per row
    # (fully-masked rows give NaN, matching the PyTorch module).
    x_mask = jax.random.bernoulli(km, p=0.3, shape=(B, L))
    x_mask = x_mask.at[:, 0].set(False)
    # nn.Linear(D, 1).weight has shape (1, D); deterministic init.
    weight = (jax.random.uniform(kw, (1, D), dtype=jnp.float32) - 0.5) * (2.0 / (D ** 0.5))

    out = attention_forward(x, x_mask, weight)
    jax.block_until_ready(out)

    ref = _reference(x, x_mask, weight)
    assert out.shape == (B, L)
    # Slightly loose tolerance: approx reciprocal (EUP) is used for the
    # softmax normalization.
    assert jnp.allclose(out, ref, atol=2e-3, rtol=2e-3), "mismatch vs reference"

    print("KERNEL_OK")
</pallas_src>

<mosaic_0001>
module attributes {stable_mosaic.version = 11 : i64} {
  func.func @_attention_kernel(%arg0: i32, %arg1: memref<2x8x32xf32, #tpu.memory_space<vmem>>, %arg2: memref<2x8xf32, #tpu.memory_space<vmem>>, %arg3: memref<1x32xf32, #tpu.memory_space<vmem>>, %arg4: memref<2x8xf32, #tpu.memory_space<vmem>>) attributes {dimension_semantics = [#tpu.dimension_semantics<parallel>], iteration_bounds = array<i64: 1>, scalar_prefetch = 0 : i64, scratch_operands = 0 : i64, tpu.core_type = #tpu.core_type<tc>, window_params = [{transform_indices = @transform_0, window_bounds = array<i64: 2, 8, 32>}, {transform_indices = @transform_1, window_bounds = array<i64: 2, 8>}, {pipeline_mode = #tpu.pipeline_mode<synchronous>, transform_indices = @transform_2, window_bounds = array<i64: 1, 32>}, {transform_indices = @transform_3, window_bounds = array<i64: 2, 8>}]} {
    %c0 = arith.constant 0 : index
    %c0_0 = arith.constant 0 : index
    %c0_1 = arith.constant 0 : index
    %0 = vector.load %arg1[%c0, %c0_0, %c0_1] : memref<2x8x32xf32, #tpu.memory_space<vmem>>, vector<2x8x32xf32>
    %c0_2 = arith.constant 0 : index
    %c0_3 = arith.constant 0 : index
    %1 = vector.load %arg3[%c0_2, %c0_3] : memref<1x32xf32, #tpu.memory_space<vmem>>, vector<1x32xf32>
    %2 = vector.shape_cast %1 : vector<1x32xf32> to vector<1x1x32xf32>
    %3 = vector.broadcast %2 : vector<1x1x32xf32> to vector<2x8x32xf32>
    %4 = arith.mulf %0, %3 : vector<2x8x32xf32>
    %cst = arith.constant dense<0.000000e+00> : vector<2x8xf32>
    %5 = vector.multi_reduction <add>, %4, %cst [2] : vector<2x8x32xf32> to vector<2x8xf32>
    %c0_4 = arith.constant 0 : index
    %c0_5 = arith.constant 0 : index
    %6 = vector.load %arg2[%c0_4, %c0_5] : memref<2x8xf32, #tpu.memory_space<vmem>>, vector<2x8xf32>
    %7 = arith.addf %5, %6 : vector<2x8xf32>
    %cst_6 = arith.constant dense<0xFF800000> : vector<2xf32>
    %8 = vector.multi_reduction <maximumf>, %7, %cst_6 [1] : vector<2x8xf32> to vector<2xf32>
    %9 = vector.shape_cast %8 : vector<2xf32> to vector<2x1xf32>
    %10 = vector.broadcast %9 : vector<2x1xf32> to vector<2x8xf32>
    %11 = arith.subf %7, %10 : vector<2x8xf32>
    %12 = math.exp %11 : vector<2x8xf32>
    %cst_7 = arith.constant dense<0.000000e+00> : vector<2xf32>
    %13 = vector.multi_reduction <add>, %12, %cst_7 [1] : vector<2x8xf32> to vector<2xf32>
    %14 = vector.shape_cast %13 : vector<2xf32> to vector<2x1xf32>
    %15 = tpu.reciprocal %14 {approx = true} : vector<2x1xf32> -> vector<2x1xf32>
    %16 = vector.broadcast %15 : vector<2x1xf32> to vector<2x8xf32>
    %17 = arith.mulf %12, %16 : vector<2x8xf32>
    %c0_8 = arith.constant 0 : index
    %c0_9 = arith.constant 0 : index
    %18 = vector.load %arg4[%c0_8, %c0_9] : memref<2x8xf32, #tpu.memory_space<vmem>>, vector<2x8xf32>
    tpu.vector_store %arg4[%c0_8, %c0_9], %17 {strides = array<i32>} : memref<2x8xf32, #tpu.memory_space<vmem>>, vector<2x8xf32>,
    return
  }
  func.func @transform_0(%arg0: i32) -> (i32, i32, i32) {
    %c0_i32 = arith.constant 0 : i32
    %c0_i32_0 = arith.constant 0 : i32
    %c0_i32_1 = arith.constant 0 : i32
    return %arg0, %c0_i32, %c0_i32_0 : i32, i32, i32
  }
  func.func @transform_1(%arg0: i32) -> (i32, i32) {
    %c0_i32 = arith.constant 0 : i32
    %c0_i32_0 = arith.constant 0 : i32
    return %arg0, %c0_i32 : i32, i32
  }
  func.func @transform_2(%arg0: i32) -> (i32, i32) {
    %c0_i32 = arith.constant 0 : i32
    %c0_i32_0 = arith.constant 0 : i32
    %c0_i32_1 = arith.constant 0 : i32
    return %c0_i32, %c0_i32_0 : i32, i32
  }
  func.func @transform_3(%arg0: i32) -> (i32, i32) {
    %c0_i32 = arith.constant 0 : i32
    %c0_i32_0 = arith.constant 0 : i32
    return %arg0, %c0_i32 : i32, i32
  }
}

</mosaic_0001>

<bundles_post_ra>
// kernel: tpu_custom_call.1
= control target key start
LH: loop header
LB: loop body
LE: loop exit
PB: predicated region body
PF: predicated region fallthrough
CT: control target
= control target key end

     0   :  { %8 = vsyncpa [#allocation3], 0  ;;  %s309_s0 = inlined_call_operand.hbm [shape: f32[2,8,32], index: 0, kind: input, shape index: {}]   ;;  %s310_s1 = inlined_call_operand.vmem [shape: f32[2,8], index: 1, kind: input, shape index: {}]   ;;  %s311_s2 = inlined_call_operand.vmem [shape: f32[1,32], index: 2, kind: input, shape index: {}]   ;;  %s312_s3 = inlined_call_operand.hbm [shape: f32[2,8], index: 3, kind: output, shape index: {}]  }
   0x1   :  { %9 = vsyncpa [#allocation4], 0  ;;  %s240_s12 = smov [#allocation2]   ;;  %s192_s16 = scalar_lea.hbm %s309_s0, 256 }
   0x2   :  { %s15_s13 = sshll.u32 %s240_s12, 4  ;;  %p193_p0 = scmp.ne.s32.totalorder %s309_s0, %s192_s16  ;;  %s16_s13 = int_to_ptr.vmem [resolvable:$true] %s15_s13 }
   0x3   :  { %p196_p1 = scmp.lt.u32.totalorder %s192_s16, %s309_s0 }
   0x5   :  { %p198_p2 = pnand %p196_p1, %p193_p0 }
   0x7   :  { %201 = shalt.err (!%p198_p2)
}
   0x8   :  { %s202_s21 = scalar_lea.vmem %s16_s13, 256  ;;  %p207_p4 = scmp.lt.s32.totalorder %s16_s13, %s16_s13 }
   0x9   :  { %p203_p3 = scmp.ne.s32.totalorder %s16_s13, %s202_s21  ;;  %p208_p5 = scmp.lt.s32.totalorder %s202_s21, %s202_s21 }
   0xb   :  { %p209_p6 = por %p208_p5, %p207_p4 }
   0xd   :  { %p210_p7 = pnand %p209_p6, %p203_p3 }
   0xf   :  { %213 = shalt.err (!%p210_p7)
}
  0x10   :  { %s241_s22 = smov 128   ;;  %s242_s23 = smov 8  }
  0x11   :  { %21 = dma.hbm_to_vmem [thread:$0]  %s309_s0, 256, %s16_s13, [#allocation3], %s241_s22, %s241_s22, %s242_s23  }
  0x12   :  { %236 = dma.done.wait [#allocation3], 256  }
  0x13   :  { %237 = vsyncadd [#allocation3], 4294967040  ;;  %v49_v0 = vlaneseq  ;;  %v29_v5 = vld [vmem:[#allocation2] sm:$0xff]  ;;  %vm40_vm0 = vcmask 261120   ;;  %v30_v7 = vld [vmem:[#allocation2 + $0x8] sm:$0xff]  ;;  %v243_v16 = vmov 0  }
  0x14   :  { %v178_v6 = vld [vmem:[%s311_s2] ss:$0 sm:$0xff]  ;;  %184 = vset.pattern.permute.xlu0 %v243_v16  ;;  %185 = vset.pattern.permute.xlu1 %v243_v16  ;;  %vm85_vm1 = vcmask 1041409   ;;  %vm88_vm2 = vcmask 58368  }
  0x15   :  { %v50_v1 = vshrl.u32 %v49_v0, 7  ;;  %v76_v2 = vand.u32 127, %v49_v0  ;;  %v38_v9 = vmul.f32 %v178_v6, %v29_v5  ;;  %v39_v10 = vmul.f32 %v178_v6, %v30_v7  ;;  %v47_v11 = vld [vmem:[%s310_s1] sm:$0x3]  ;;  %s244_s1 = smov [#allocation5]  }
  0x16   :  { %s169_s2 = sshll.u32 %s244_s1, 4  ;;  %s170_s2 = int_to_ptr.vmem [resolvable:$true] %s169_s2 }
  0x17   :  { %v277_v3 = vsub.s32 %v76_v2, %v50_v1  ;;  %v51_v4 = vsub.s32 0, %v50_v1  ;;  %v58_v8 = vsub.s32 1, %v50_v1  ;;  %v41_v13 = vsel %vm40_vm0, %v38_v9, 0.0  ;;  %s214_s29 = scalar_lea.vmem %s170_s2, 32  ;;  %p219_p9 = scmp.lt.s32.totalorder %s170_s2, %s170_s2 }
  0x18   :  { %42 = vadd.xlane.f32.xlu0 %v41_v13  ;;  %v44_v15 = vsel %vm40_vm0, %v39_v10, 0.0  ;;  %p215_p8 = scmp.ne.s32.totalorder %s170_s2, %s214_s29  ;;  %p220_p10 = scmp.lt.s32.totalorder %s214_s29, %s214_s29 }
  0x19   :  { %v52_v12 = vrot.slane %v47_v11, %v51_v4  ;;  %v59_v14 = vrot.slane %v47_v11, %v58_v8 }
  0x1a   :  { %p221_p11 = por %p220_p10, %p219_p9 }
  0x1b   :  { %54 = vbcast.lane.b32.xlu1 %v52_v12, 256 }
  0x1c   :  { %45 = vadd.xlane.f32.xlu0 %v44_v15  ;;  %p222_p12 = pnand %p221_p11, %p215_p8 }
  0x1f   :  { %61 = vbcast.lane.b32.xlu1 %v59_v14, 256 }
  0x8d   :  { %v55_v17 = vpop.permute.xlu1 %54 }
  0x91   :  { %v62_v20 = vpop.permute.xlu1 %61 }
  0xa5   :  { %v43_v18 = vpop.xlane.xlu0 %42 }
  0xa6   :  { %v65_v19 = vadd.f32 %v55_v17, %v43_v18 }
  0xa8   :  { %70 = vperm.xlu0 %184, %v65_v19  }
  0xa9   :  { %v46_v21 = vpop.xlane.xlu0 %45 }
  0xaa   :  { %v66_v22 = vadd.f32 %v62_v20, %v46_v21 }
  0xac   :  { %73 = vperm.xlu1 %185, %v66_v22  }
 0x127   :  { %v71_v23 = vpop.permute.xlu0 %70 }
 0x128   :  { %v80_v25 = vrot.slane %v71_v23, %v277_v3 }
 0x12b   :  { %v74_v24 = vpop.permute.xlu1 %73 }
 0x12c   :  { %v84_v26 = vrot.slane %v74_v24, %v277_v3 }
 0x12e   :  { %v86_v27 = vsel %vm85_vm1, %v84_v26, %v80_v25 }
 0x12f   :  { %v89_v28 = vsel %vm88_vm2, %v86_v27, -inf }
 0x130   :  { %90 = vmax.xlane.f32.xlu1 %v89_v28 }
 0x1bd   :  { %v91_v29 = vpop.xlane.xlu1 %90 }
 0x1be   :  { %v96_v30 = vrot.slane %v91_v29, %v51_v4  ;;  %v100_v31 = vrot.slane %v91_v29, %v58_v8 }
 0x1c0   :  { %v103_v32 = vsub.f32 %v65_v19, %v96_v30  ;;  %v104_v33 = vsub.f32 %v66_v22, %v100_v31 }
 0x1c2   :  { %v105_v34 = vmul.f32 1.442695, %v103_v32  ;;  %v107_v35 = vmul.f32 1.442695, %v104_v33 }
 0x1c4   :  { %186 = vpow2.f32 %v105_v34 }
 0x1c5   :  { %188 = vpow2.f32 %v107_v35 }
 0x1ce   :  { %v187_v36 = vpop.eup %186 }
 0x1cf   :  { %v189_v37 = vpop.eup %188  ;;  %112 = vperm.xlu1 %185, %v187_v36  }
 0x1d0   :  { %115 = vperm.xlu0 %184, %v189_v37  }
 0x24e   :  { %v113_v38 = vpop.permute.xlu1 %112 }
 0x24f   :  { %v116_v39 = vpop.permute.xlu0 %115  ;;  %v120_v40 = vrot.slane %v113_v38, %v277_v3 }
 0x250   :  { %v124_v41 = vrot.slane %v116_v39, %v277_v3 }
 0x252   :  { %v125_v42 = vsel %vm85_vm1, %v124_v41, %v120_v40 }
 0x253   :  { %v127_v43 = vsel %vm88_vm2, %v125_v42, 0.0 }
 0x254   :  { %128 = vadd.xlane.f32.xlu0 %v127_v43 }
 0x2e1   :  { %v129_v44 = vpop.xlane.xlu0 %128 }
 0x2e2   :  { %190 = vrcp.f32 %v129_v44 }
 0x2ec   :  { %v191_v45 = vpop.eup %190 }
 0x2ed   :  { %v135_v46 = vrot.slane %v191_v45, %v51_v4  ;;  %v139_v48 = vrot.slane %v191_v45, %v58_v8 }
 0x2ef   :  { %v142_v47 = vmul.f32 %v187_v36, %v135_v46  ;;  %v143_v49 = vmul.f32 %v189_v37, %v139_v48 }
 0x2f1   :  { %147 = vperm.xlu1 %185, %v142_v47  }
 0x2f5   :  { %150 = vperm.xlu1 %185, %v143_v49  }
 0x370   :  { %v148_v50 = vpop.permute.xlu1 %147 }
 0x371   :  { %v155_v52 = vrot.slane %v148_v50, %v277_v3 }
 0x374   :  { %v151_v51 = vpop.permute.xlu1 %150 }
 0x375   :  { %v159_v53 = vrot.slane %v151_v51, %v277_v3 }
 0x377   :  { %v160_v54 = vsel %vm85_vm1, %v159_v53, %v155_v52 }
 0x378   :  { %162 = vst.msk [vmem:[#allocation5] sm:$0x3] %vm88_vm2, %v160_v54 }
 0x379   :  { %225 = shalt.err (!%p222_p12)
}
 0x37a   :  { %s226_s5 = scalar_lea.hbm %s312_s3, 32 }
 0x37b   :  { %p227_p13 = scmp.ne.s32.totalorder %s312_s3, %s226_s5  ;;  %p230_p0 = scmp.lt.u32.totalorder %s226_s5, %s312_s3 }
 0x37d   :  { %p232_p1 = pnand %p230_p0, %p227_p13 }
 0x37f   :  { %235 = shalt.err (!%p232_p1)
}
 0x380   :  { %172 = dma.vmem_to_hbm [thread:$0]  %s170_s2, 32, %s312_s3, [#allocation4]  }
 0x381   :  { %238 = dma.done.wait [#allocation4], 32  }
 0x382   :  { %239 = vsyncadd [#allocation4], 4294967264 }
 0x383   :  { %176 = vsyncpa [#allocation3], 1 }
 0x384   :  { %177 = vsyncpa [#allocation4], 1 }

</bundles_post_ra>
